<compile_context>
chip_gen: v7x
topology: tpu7x:2x2x1
jax: 0.10.0
libtpu: 0.0.40
codegen_flags: <defaults>
</compile_context>

<pallas_src>
import functools

import jax
import jax.numpy as jnp
from jax import lax
from jax.experimental import pallas as pl
from jax.experimental.pallas import tpu as pltpu


def _colsum(x3):
    """(b, t, f) f32 -> (1, f) column sums via two single-axis reductions."""
    return jnp.sum(jnp.sum(x3, axis=0), axis=0, keepdims=True)


def _stats_kernel(rec_ref, orig_ref, grams_ref, vecs_ref, *,
                  tile_b, T, F, B, steps_per_core):
    p = pl.program_id(0)          # parallel partial-stats bank
    s = pl.program_id(1)          # sequential reduction over batch chunks

    @pl.when(s == 0)
    def _init():
        grams_ref[...] = jnp.zeros_like(grams_ref)
        vecs_ref[...] = jnp.zeros_like(vecs_ref)

    # Global batch-chunk index. It may overshoot the real chunk count (ragged
    # parallel split) and the last real chunk may be a partial edge block; both
    # cases are handled by masking rows with global batch index >= B.
    chunk = p * steps_per_core + s
    row0 = chunk * tile_b

    r_raw = rec_ref[...]
    o_raw = orig_ref[...]

    b_ids = lax.broadcasted_iota(jnp.int32, (tile_b, T, F), 0)
    valid_b = (b_ids + row0) < B
    r_m = jnp.where(valid_b, r_raw, 0)     # native dtype, masked
    o_m = jnp.where(valid_b, o_raw, 0)

    # ---- MXU: rec/orig Grams + cross-Gram in the native dtype, f32 accumulate.
    # diag(gram_r), diag(gram_o), diag(gram_ro) give the per-feature second
    # moments and the rec*orig cross term, so no separate VPU/XLU passes needed.
    rf = r_m.reshape(tile_b * T, F)
    of = o_m.reshape(tile_b * T, F)
    dims = (((0,), (0,)), ((), ()))
    grams_ref[0] += lax.dot_general(rf, rf, dims,
                                    preferred_element_type=jnp.float32)
    grams_ref[1] += lax.dot_general(of, of, dims,
                                    preferred_element_type=jnp.float32)
    grams_ref[2] += lax.dot_general(rf, of, dims,
                                    preferred_element_type=jnp.float32)

    # ---- first moments + first-order time-difference moments (f32).
    r32 = r_m.astype(jnp.float32)
    o32 = o_m.astype(jnp.float32)
    cs_r = _colsum(r32)
    cs_o = _colsum(o32)

    dr = r32[:, 1:, :] - r32[:, :-1, :]     # (tile_b, T-1, F); masked rows -> 0
    do_ = o32[:, 1:, :] - o32[:, :-1, :]
    dr2 = _colsum(dr * dr)
    do2 = _colsum(do_ * do_)
    drdo = _colsum(dr * do_)

    # One wide (8, F) accumulator update (rows 5..7 are padding).
    vecs_ref[...] += jnp.concatenate(
        [cs_r, cs_o, dr2, do2, drdo, jnp.zeros((3, F), jnp.float32)], axis=0)


def _pick_tile_b(B, T, F, in_itemsize, budget_bytes):
    """Largest batch tile whose resident pipeline footprint fits the budget:
    2 inputs x 2 pipeline buffers + ~8 f32 temporaries per element + the
    (double-buffered) Gram / row-stat output accumulators."""
    fixed = 2 * (3 * F * F + 8 * F) * 4
    per_b = T * F * (2 * 2 * in_itemsize + 8 * 4)
    avail = max(budget_bytes - fixed, per_b)
    return int(max(1, min(B, avail // per_b)))


def combined_loss(reconstructed, original, alpha=0.5, beta=0.15, tile_b=None):
    assert alpha + beta <= 1.0, "alpha + beta deve essere <= 1"
    assert reconstructed.shape == original.shape and reconstructed.ndim == 3
    B, T, F = reconstructed.shape
    assert T >= 2
    in_itemsize = jnp.dtype(reconstructed.dtype).itemsize

    # Generation-aware VMEM budgets (v7x 64 MiB, v5e/v6e 128 MiB physical).
    try:
        vmem_cap = int(pltpu.get_tpu_info().vmem_capacity_bytes)
    except Exception:
        vmem_cap = 64 << 20
    total_budget = min(vmem_cap // 3, 28 << 20)
    vmem_limit = int(min(vmem_cap * 0.7, total_budget + (16 << 20)))

    if tile_b is None:
        tile_b = _pick_tile_b(B, T, F, in_itemsize, total_budget)
    tile_b = int(min(max(int(tile_b), 1), B))

    num_chunks = pl.cdiv(B, tile_b)
    # Leading "parallel" axis: both TensorCores on v7x, pairwise partial-sum
    # combine everywhere else (single TC just iterates it).
    num_parallel = 2 if num_chunks >= 2 else 1
    steps_per_core = pl.cdiv(num_chunks, num_parallel)
    grid = (num_parallel, steps_per_core)

    kernel = functools.partial(
        _stats_kernel, tile_b=tile_b, T=T, F=F, B=B,
        steps_per_core=steps_per_core)

    def in_map(p, s):
        # Clamp overshoot chunks onto the last real chunk; their contribution
        # is zeroed in-kernel via the row mask (which uses the unclamped index).
        c = jnp.minimum(p * steps_per_core + s, num_chunks - 1)
        return (c, 0, 0)

    cost = pl.CostEstimate(
        flops=6 * B * T * F * F + 20 * B * T * F,
        transcendentals=0,
        bytes_accessed=(2 * B * T * F * in_itemsize
                        + num_parallel * (3 * F * F + 8 * F) * 4),
    )

    grams, vecs = pl.pallas_call(
        kernel,
        out_shape=(
            jax.ShapeDtypeStruct((num_parallel * 3, F, F), jnp.float32),
            jax.ShapeDtypeStruct((num_parallel * 8, F), jnp.float32),
        ),
        grid_spec=pltpu.PrefetchScalarGridSpec(
            num_scalar_prefetch=0,
            grid=grid,
            in_specs=[
                pl.BlockSpec((tile_b, T, F), in_map),
                pl.BlockSpec((tile_b, T, F), in_map),
            ],
            out_specs=(
                pl.BlockSpec((3, F, F), lambda p, s: (p, 0, 0)),
                pl.BlockSpec((8, F), lambda p, s: (p, 0)),
            ),
        ),
        compiler_params=pltpu.CompilerParams(
            dimension_semantics=("parallel", "arbitrary"),
            vmem_limit_bytes=vmem_limit,
        ),
        cost_estimate=cost,
    )(reconstructed, original)

    # ---- tiny O(F^2) combine + epilogue on the sufficient statistics --------
    grams = grams.reshape(num_parallel, 3, F, F).sum(axis=0)
    vecs = vecs.reshape(num_parallel, 8, F).sum(axis=0)
    gram_r, gram_o, gram_ro = grams[0], grams[1], grams[2]
    cs_r, cs_o = vecs[0], vecs[1]
    sum_dr2, sum_do2, sum_drdo = vecs[2].sum(), vecs[3].sum(), vecs[4].sum()

    nf = float(B * T * F)
    bt = float(B * T)

    sq_r = jnp.diagonal(gram_r)
    sq_o = jnp.diagonal(gram_o)
    x_ro = jnp.diagonal(gram_ro)

    sum_r, sum_o = cs_r.sum(), cs_o.sum()
    sum_r2, sum_o2, sum_ro = sq_r.sum(), sq_o.sum(), x_ro.sum()

    mean_r = sum_r / nf
    mean_o = sum_o / nf
    var_r = (sum_r2 - nf * mean_r * mean_r) / (nf - 1.0)   # unbiased (torch.std)
    var_o = (sum_o2 - nf * mean_o * mean_o) / (nf - 1.0)
    a = 1.0 / (jnp.sqrt(jnp.maximum(var_r, 0.0)) + 1e-6)   # rec_n = a*rec + b
    c = 1.0 / (jnp.sqrt(jnp.maximum(var_o, 0.0)) + 1e-6)   # orig_n = c*orig + d
    bd = (-mean_r * a) - (-mean_o * c)                      # b - d

    # MSE of the normalized difference expanded in raw moments.
    sum_diff2 = (a * a * sum_r2 + c * c * sum_o2 - 2.0 * a * c * sum_ro
                 + 2.0 * bd * (a * sum_r - c * sum_o) + nf * bd * bd)
    mse_loss = sum_diff2 / nf

    # Temporal consistency: normalization shifts cancel in time differences.
    temp_loss = (a * a * sum_dr2 + c * c * sum_do2
                 - 2.0 * a * c * sum_drdo) / float(B * (T - 1) * F)

    # Feature correlation of the normalized tensors from raw Gram/column stats
    # (cov is shift-invariant; the global scale enters as scale^2 everywhere).
    def corr(gram, colsum, scale):
        m = colsum / bt
        cov = (gram - bt * jnp.outer(m, m)) / (bt - 1.0)
        std = jnp.sqrt(jnp.maximum(jnp.diagonal(cov), 0.0))
        s2 = scale * scale
        return (s2 * cov) / (s2 * jnp.outer(std, std) + 1e-8)

    cd = corr(gram_r, cs_r, a) - corr(gram_o, cs_o, c)
    feat_loss = jnp.sum(cd * cd) / float(F * F)

    return (alpha * mse_loss
            + (1.0 - alpha - beta) * temp_loss
            + beta * feat_loss)


# ---------------------------------------------------------------------------
# Pure-JAX reference (mirrors the PyTorch module) for correctness checks.
# ---------------------------------------------------------------------------
def _reference_loss(rec, orig, alpha=0.5, beta=0.15):
    rec = rec.astype(jnp.float32)
    orig = orig.astype(jnp.float32)

    def norm(x):
        return (x - x.mean()) / (x.std(ddof=1) + 1e-6)

    rn, on = norm(rec), norm(orig)
    mse = jnp.mean((rn - on) ** 2)
    temp = jnp.mean(((rn[:, 1:] - rn[:, :-1]) - (on[:, 1:] - on[:, :-1])) ** 2)

    def corr(x):
        b, t, f = x.shape
        xf = x.reshape(-1, f)
        cn = xf - xf.mean(axis=0, keepdims=True)
        cov = cn.T @ cn / (b * t - 1)
        std = jnp.sqrt(jnp.diag(cov)).reshape(-1, 1)
        return cov / (std @ std.T + 1e-8)

    feat = jnp.mean((corr(rn) - corr(on)) ** 2)
    return alpha * mse + (1 - alpha - beta) * temp + beta * feat


if __name__ == "__main__":
    key = jax.random.PRNGKey(0)
    k1, k2, k3, k4, k5, k6 = jax.random.split(key, 6)

    # Case 1: odd batch + forced tile_b=1 -> ragged (parallel, arbitrary) grid
    # (2,2) covering 3 real chunks; the overshoot chunk is fully masked.
    B, T, F = 3, 8, 32
    orig1 = jax.random.normal(k1, (B, T, F), dtype=jnp.float32)
    rec1 = orig1 + 0.1 * jax.random.normal(k2, (B, T, F), dtype=jnp.float32)
    loss1 = jax.block_until_ready(combined_loss(rec1, orig1, tile_b=1))
    ref1 = _reference_loss(rec1, orig1)
    assert jnp.allclose(loss1, ref1, rtol=1e-3, atol=1e-5), (loss1, ref1)

    # Case 2: lane-dense features, automatic single-chunk tiling.
    B2, T2, F2 = 4, 16, 128
    orig2 = jax.random.normal(k3, (B2, T2, F2), dtype=jnp.float32)
    rec2 = orig2 + 0.1 * jax.random.normal(k4, (B2, T2, F2), dtype=jnp.float32)
    loss2 = jax.block_until_ready(combined_loss(rec2, orig2))
    ref2 = _reference_loss(rec2, orig2)
    assert jnp.allclose(loss2, ref2, rtol=1e-3, atol=1e-5), (loss2, ref2)

    # Case 3: bf16 inputs (native-dtype MXU Grams) + partial last batch block.
    B3, T3, F3 = 5, 8, 128
    orig3 = jax.random.normal(k5, (B3, T3, F3), dtype=jnp.float32).astype(jnp.bfloat16)
    rec3 = (orig3.astype(jnp.float32)
            + 0.1 * jax.random.normal(k6, (B3, T3, F3), dtype=jnp.float32)
            ).astype(jnp.bfloat16)
    loss3 = jax.block_until_ready(combined_loss(rec3, orig3, tile_b=2))
    ref3 = _reference_loss(rec3, orig3)
    assert jnp.allclose(loss3, ref3, rtol=2e-3, atol=1e-4), (loss3, ref3)

    print("KERNEL_OK")
</pallas_src>

<mosaic_0001>
module attributes {stable_mosaic.version = 11 : i64} {
  func.func @_stats_kernel(%arg0: i32, %arg1: i32, %arg2: memref<1x8x32xf32, #tpu.memory_space<vmem>>, %arg3: memref<1x8x32xf32, #tpu.memory_space<vmem>>, %arg4: memref<3x32x32xf32, #tpu.memory_space<vmem>>, %arg5: memref<8x32xf32, #tpu.memory_space<vmem>>) attributes {dimension_semantics = [#tpu.dimension_semantics<parallel>, #tpu.dimension_semantics<arbitrary>], iteration_bounds = array<i64: 2, 2>, scalar_prefetch = 0 : i64, scratch_operands = 0 : i64, tpu.core_type = #tpu.core_type<tc>, window_params = [{transform_indices = @transform_0, window_bounds = array<i64: 1, 8, 32>}, {transform_indices = @transform_1, window_bounds = array<i64: 1, 8, 32>}, {transform_indices = @transform_2, window_bounds = array<i64: 3, 32, 32>}, {transform_indices = @transform_3, window_bounds = array<i64: 8, 32>}]} {
    %c0_i32 = arith.constant 0 : i32
    %0 = arith.cmpi eq, %arg1, %c0_i32 : i32
    %1 = arith.extui %0 : i1 to i32
    %c0_i32_0 = arith.constant 0 : i32
    %2 = arith.cmpi ne, %1, %c0_i32_0 : i32
    scf.if %2 {
      %cst_41 = arith.constant 0.000000e+00 : f32
      %71 = vector.broadcast %cst_41 : f32 to vector<3x32x32xf32>
      %c0_42 = arith.constant 0 : index
      %c0_43 = arith.constant 0 : index
      %c0_44 = arith.constant 0 : index
      %72 = vector.load %arg4[%c0_42, %c0_43, %c0_44] : memref<3x32x32xf32, #tpu.memory_space<vmem>>, vector<3x32x32xf32>
      tpu.vector_store %arg4[%c0_42, %c0_43, %c0_44], %71 {strides = array<i32>} : memref<3x32x32xf32, #tpu.memory_space<vmem>>, vector<3x32x32xf32>,
      %cst_45 = arith.constant 0.000000e+00 : f32
      %73 = vector.broadcast %cst_45 : f32 to vector<8x32xf32>
      %c0_46 = arith.constant 0 : index
      %c0_47 = arith.constant 0 : index
      %74 = vector.load %arg5[%c0_46, %c0_47] : memref<8x32xf32, #tpu.memory_space<vmem>>, vector<8x32xf32>
      tpu.vector_store %arg5[%c0_46, %c0_47], %73 {strides = array<i32>} : memref<8x32xf32, #tpu.memory_space<vmem>>, vector<8x32xf32>,
    } else {
    }
    %c2_i32 = arith.constant 2 : i32
    %3 = arith.muli %arg0, %c2_i32 : i32
    %4 = arith.addi %3, %arg1 : i32
    %c1_i32 = arith.constant 1 : i32
    %5 = arith.muli %4, %c1_i32 : i32
    %c0 = arith.constant 0 : index
    %c0_1 = arith.constant 0 : index
    %c0_2 = arith.constant 0 : index
    %6 = vector.load %arg2[%c0, %c0_1, %c0_2] : memref<1x8x32xf32, #tpu.memory_space<vmem>>, vector<1x8x32xf32>
    %c0_3 = arith.constant 0 : index
    %c0_4 = arith.constant 0 : index
    %c0_5 = arith.constant 0 : index
    %7 = vector.load %arg3[%c0_3, %c0_4, %c0_5] : memref<1x8x32xf32, #tpu.memory_space<vmem>>, vector<1x8x32xf32>
    %8 = tpu.iota {dimensions = array<i32: 0>} : vector<1x8x32xi32>
    %9 = vector.broadcast %5 : i32 to vector<1x8x32xi32>
    %10 = arith.addi %8, %9 : vector<1x8x32xi32>
    %c3_i32 = arith.constant 3 : i32
    %11 = vector.broadcast %c3_i32 : i32 to vector<1x8x32xi32>
    %12 = arith.cmpi slt, %10, %11 : vector<1x8x32xi32>
    %c0_i32_6 = arith.constant 0 : i32
    %13 = arith.sitofp %c0_i32_6 : i32 to f32
    %14 = vector.broadcast %13 : f32 to vector<1x8x32xf32>
    %15 = arith.select %12, %6, %14 : vector<1x8x32xi1>, vector<1x8x32xf32>
    %c0_i32_7 = arith.constant 0 : i32
    %16 = arith.sitofp %c0_i32_7 : i32 to f32
    %17 = vector.broadcast %16 : f32 to vector<1x8x32xf32>
    %18 = arith.select %12, %7, %17 : vector<1x8x32xi1>, vector<1x8x32xf32>
    %19 = vector.shape_cast %15 : vector<1x8x32xf32> to vector<8x32xf32>
    %20 = vector.shape_cast %18 : vector<1x8x32xf32> to vector<8x32xf32>
    %c0_8 = arith.constant 0 : index
    %c0_9 = arith.constant 0 : index
    %c0_10 = arith.constant 0 : index
    %21 = vector.load %arg4[%c0_8, %c0_9, %c0_10] : memref<3x32x32xf32, #tpu.memory_space<vmem>>, vector<1x32x32xf32>
    %22 = vector.shape_cast %21 : vector<1x32x32xf32> to vector<32x32xf32>
    %cst = arith.constant dense<0.000000e+00> : vector<32x32xf32>
    %23 = tpu.matmul %19, %19, %cst {dimension_numbers = #tpu.dot_dimension_numbers<[0], [0], [1], [1], [0, 1, 1, 1], [], []>} : vector<8x32xf32>, vector<8x32xf32>, vector<32x32xf32> -> vector<32x32xf32>
    %24 = arith.addf %22, %23 : vector<32x32xf32>
    %c0_11 = arith.constant 0 : index
    %c0_12 = arith.constant 0 : index
    %c0_13 = arith.constant 0 : index
    %25 = vector.load %arg4[%c0_11, %c0_12, %c0_13] : memref<3x32x32xf32, #tpu.memory_space<vmem>>, vector<1x32x32xf32>
    %26 = vector.shape_cast %25 : vector<1x32x32xf32> to vector<32x32xf32>
    %27 = vector.shape_cast %24 : vector<32x32xf32> to vector<1x32x32xf32>
    tpu.vector_store %arg4[%c0_11, %c0_12, %c0_13], %27 {strides = array<i32>} : memref<3x32x32xf32, #tpu.memory_space<vmem>>, vector<1x32x32xf32>,
    %c1 = arith.constant 1 : index
    %c0_14 = arith.constant 0 : index
    %c0_15 = arith.constant 0 : index
    %28 = vector.load %arg4[%c1, %c0_14, %c0_15] : memref<3x32x32xf32, #tpu.memory_space<vmem>>, vector<1x32x32xf32>
    %29 = vector.shape_cast %28 : vector<1x32x32xf32> to vector<32x32xf32>
    %cst_16 = arith.constant dense<0.000000e+00> : vector<32x32xf32>
    %30 = tpu.matmul %20, %20, %cst_16 {dimension_numbers = #tpu.dot_dimension_numbers<[0], [0], [1], [1], [0, 1, 1, 1], [], []>} : vector<8x32xf32>, vector<8x32xf32>, vector<32x32xf32> -> vector<32x32xf32>
    %31 = arith.addf %29, %30 : vector<32x32xf32>
    %c1_17 = arith.constant 1 : index
    %c0_18 = arith.constant 0 : index
    %c0_19 = arith.constant 0 : index
    %32 = vector.load %arg4[%c1_17, %c0_18, %c0_19] : memref<3x32x32xf32, #tpu.memory_space<vmem>>, vector<1x32x32xf32>
    %33 = vector.shape_cast %32 : vector<1x32x32xf32> to vector<32x32xf32>
    %34 = vector.shape_cast %31 : vector<32x32xf32> to vector<1x32x32xf32>
    tpu.vector_store %arg4[%c1_17, %c0_18, %c0_19], %34 {strides = array<i32>} : memref<3x32x32xf32, #tpu.memory_space<vmem>>, vector<1x32x32xf32>,
    %c2 = arith.constant 2 : index
    %c0_20 = arith.constant 0 : index
    %c0_21 = arith.constant 0 : index
    %35 = vector.load %arg4[%c2, %c0_20, %c0_21] : memref<3x32x32xf32, #tpu.memory_space<vmem>>, vector<1x32x32xf32>
    %36 = vector.shape_cast %35 : vector<1x32x32xf32> to vector<32x32xf32>
    %cst_22 = arith.constant dense<0.000000e+00> : vector<32x32xf32>
    %37 = tpu.matmul %19, %20, %cst_22 {dimension_numbers = #tpu.dot_dimension_numbers<[0], [0], [1], [1], [0, 1, 1, 1], [], []>} : vector<8x32xf32>, vector<8x32xf32>, vector<32x32xf32> -> vector<32x32xf32>
    %38 = arith.addf %36, %37 : vector<32x32xf32>
    %c2_23 = arith.constant 2 : index
    %c0_24 = arith.constant 0 : index
    %c0_25 = arith.constant 0 : index
    %39 = vector.load %arg4[%c2_23, %c0_24, %c0_25] : memref<3x32x32xf32, #tpu.memory_space<vmem>>, vector<1x32x32xf32>
    %40 = vector.shape_cast %39 : vector<1x32x32xf32> to vector<32x32xf32>
    %41 = vector.shape_cast %38 : vector<32x32xf32> to vector<1x32x32xf32>
    tpu.vector_store %arg4[%c2_23, %c0_24, %c0_25], %41 {strides = array<i32>} : memref<3x32x32xf32, #tpu.memory_space<vmem>>, vector<1x32x32xf32>,
    %cst_26 = arith.constant dense<0.000000e+00> : vector<8x32xf32>
    %42 = vector.multi_reduction <add>, %15, %cst_26 [0] : vector<1x8x32xf32> to vector<8x32xf32>
    %cst_27 = arith.constant dense<0.000000e+00> : vector<32xf32>
    %43 = vector.multi_reduction <add>, %42, %cst_27 [0] : vector<8x32xf32> to vector<32xf32>
    %44 = vector.shape_cast %43 : vector<32xf32> to vector<1x32xf32>
    %cst_28 = arith.constant dense<0.000000e+00> : vector<8x32xf32>
    %45 = vector.multi_reduction <add>, %18, %cst_28 [0] : vector<1x8x32xf32> to vector<8x32xf32>
    %cst_29 = arith.constant dense<0.000000e+00> : vector<32xf32>
    %46 = vector.multi_reduction <add>, %45, %cst_29 [0] : vector<8x32xf32> to vector<32xf32>
    %47 = vector.shape_cast %46 : vector<32xf32> to vector<1x32xf32>
    %48 = vector.extract_strided_slice %15 {offsets = [0, 1, 0], sizes = [1, 7, 32], strides = [1, 1, 1]} : vector<1x8x32xf32> to vector<1x7x32xf32>
    %49 = vector.extract_strided_slice %15 {offsets = [0, 0, 0], sizes = [1, 7, 32], strides = [1, 1, 1]} : vector<1x8x32xf32> to vector<1x7x32xf32>
    %50 = arith.subf %48, %49 : vector<1x7x32xf32>
    %51 = vector.extract_strided_slice %18 {offsets = [0, 1, 0], sizes = [1, 7, 32], strides = [1, 1, 1]} : vector<1x8x32xf32> to vector<1x7x32xf32>
    %52 = vector.extract_strided_slice %18 {offsets = [0, 0, 0], sizes = [1, 7, 32], strides = [1, 1, 1]} : vector<1x8x32xf32> to vector<1x7x32xf32>
    %53 = arith.subf %51, %52 : vector<1x7x32xf32>
    %54 = arith.mulf %50, %50 : vector<1x7x32xf32>
    %cst_30 = arith.constant dense<0.000000e+00> : vector<7x32xf32>
    %55 = vector.multi_reduction <add>, %54, %cst_30 [0] : vector<1x7x32xf32> to vector<7x32xf32>
    %cst_31 = arith.constant dense<0.000000e+00> : vector<32xf32>
    %56 = vector.multi_reduction <add>, %55, %cst_31 [0] : vector<7x32xf32> to vector<32xf32>
    %57 = vector.shape_cast %56 : vector<32xf32> to vector<1x32xf32>
    %58 = arith.mulf %53, %53 : vector<1x7x32xf32>
    %cst_32 = arith.constant dense<0.000000e+00> : vector<7x32xf32>
    %59 = vector.multi_reduction <add>, %58, %cst_32 [0] : vector<1x7x32xf32> to vector<7x32xf32>
    %cst_33 = arith.constant dense<0.000000e+00> : vector<32xf32>
    %60 = vector.multi_reduction <add>, %59, %cst_33 [0] : vector<7x32xf32> to vector<32xf32>
    %61 = vector.shape_cast %60 : vector<32xf32> to vector<1x32xf32>
    %62 = arith.mulf %50, %53 : vector<1x7x32xf32>
    %cst_34 = arith.constant dense<0.000000e+00> : vector<7x32xf32>
    %63 = vector.multi_reduction <add>, %62, %cst_34 [0] : vector<1x7x32xf32> to vector<7x32xf32>
    %cst_35 = arith.constant dense<0.000000e+00> : vector<32xf32>
    %64 = vector.multi_reduction <add>, %63, %cst_35 [0] : vector<7x32xf32> to vector<32xf32>
    %65 = vector.shape_cast %64 : vector<32xf32> to vector<1x32xf32>
    %c0_36 = arith.constant 0 : index
    %c0_37 = arith.constant 0 : index
    %66 = vector.load %arg5[%c0_36, %c0_37] : memref<8x32xf32, #tpu.memory_space<vmem>>, vector<8x32xf32>
    %cst_38 = arith.constant 0.000000e+00 : f32
    %67 = vector.broadcast %cst_38 : f32 to vector<3x32xf32>
    %68 = tpu.concatenate %44, %47, %57, %61, %65, %67 in 0 : vector<1x32xf32>, vector<1x32xf32>, vector<1x32xf32>, vector<1x32xf32>, vector<1x32xf32>, vector<3x32xf32> -> vector<8x32xf32>
    %69 = arith.addf %66, %68 : vector<8x32xf32>
    %c0_39 = arith.constant 0 : index
    %c0_40 = arith.constant 0 : index
    %70 = vector.load %arg5[%c0_39, %c0_40] : memref<8x32xf32, #tpu.memory_space<vmem>>, vector<8x32xf32>
    tpu.vector_store %arg5[%c0_39, %c0_40], %69 {strides = array<i32>} : memref<8x32xf32, #tpu.memory_space<vmem>>, vector<8x32xf32>,
    return
  }
  func.func @transform_0(%arg0: i32, %arg1: i32) -> (i32, i32, i32) {
    %c2_i32 = arith.constant 2 : i32
    %0 = arith.muli %arg0, %c2_i32 : i32
    %1 = arith.addi %0, %arg1 : i32
    %c2_i32_0 = arith.constant 2 : i32
    %2 = arith.minsi %1, %c2_i32_0 : i32
    %c0_i32 = arith.constant 0 : i32
    %c0_i32_1 = arith.constant 0 : i32
    %c0_i32_2 = arith.constant 0 : i32
    return %2, %c0_i32, %c0_i32_1 : i32, i32, i32
  }
  func.func @transform_1(%arg0: i32, %arg1: i32) -> (i32, i32, i32) {
    %c2_i32 = arith.constant 2 : i32
    %0 = arith.muli %arg0, %c2_i32 : i32
    %1 = arith.addi %0, %arg1 : i32
    %c2_i32_0 = arith.constant 2 : i32
    %2 = arith.minsi %1, %c2_i32_0 : i32
    %c0_i32 = arith.constant 0 : i32
    %c0_i32_1 = arith.constant 0 : i32
    %c0_i32_2 = arith.constant 0 : i32
    return %2, %c0_i32, %c0_i32_1 : i32, i32, i32
  }
  func.func @transform_2(%arg0: i32, %arg1: i32) -> (i32, i32, i32) {
    %c0_i32 = arith.constant 0 : i32
    %c0_i32_0 = arith.constant 0 : i32
    %c0_i32_1 = arith.constant 0 : i32
    return %arg0, %c0_i32, %c0_i32_0 : i32, i32, i32
  }
  func.func @transform_3(%arg0: i32, %arg1: i32) -> (i32, i32) {
    %c0_i32 = arith.constant 0 : i32
    %c0_i32_0 = arith.constant 0 : i32
    return %arg0, %c0_i32 : i32, i32
  }
}

</mosaic_0001>

<bundles_post_ra>
// kernel: tpu_custom_call.1
= control target key start
LH: loop header
LB: loop body
LE: loop exit
PB: predicated region body
PF: predicated region fallthrough
CT: control target
= control target key end

     0   :  { %s1810_s0 = inlined_call_operand.hbm [shape: f32[3,8,32], index: 0, kind: input, shape index: {}]   ;;  %s1811_s1 = inlined_call_operand.hbm [shape: f32[3,8,32], index: 1, kind: input, shape index: {}]   ;;  %s1812_s2 = inlined_call_operand.hbm [shape: f32[6,32,32], index: 2, kind: output, shape index: {0}]   ;;  %s1813_s3 = inlined_call_operand.hbm [shape: f32[16,32], index: 3, kind: output, shape index: {1}]  }
   0x1   :  { %1821 = sst [smem:[#allocation17_spill]] %s1810_s0 }
   0x2   :  { %9 = vsyncpa [#allocation3], 0 }
   0x3   :  { %11 = vsyncpa [#allocation3 + $0x1], 0 }
   0x4   :  { %12 = vsyncpa [#allocation6], 0 }
   0x5   :  { %14 = vsyncpa [#allocation6 + $0x1], 0 }
   0x6   :  { %15 = vsyncpa [#allocation4], 0 }
   0x7   :  { %17 = vsyncpa [#allocation4 + $0x1], 0 }
   0x8   :  { %18 = vsyncpa [#allocation9], 0 }
   0x9   :  { %20 = vsyncpa [#allocation9 + $0x1], 0  ;;  %s1399_s12 = smov 0   ;;  %s1401_s13 = smov 0  }
   0xa   :  { %s1403_s14 = smov 0   ;;  %s1405_s15 = smov 0  }
   0xb   :  { %s1407_s16 = smov 0   ;;  %s1409_s17 = smov 0  }
   0xc   :  { %s1411_s18 = smov 0   ;;  %s1413_s19 = smov 0  }
   0xd   :  { %s1415_s20 = smov 0   ;;  %s1417_s21 = smov 0  }
   0xe   :  { %s1419_s22 = smov 0  }
   0xf LB: > { %1822 = sst [smem:[#allocation14_spill]] %s1366_s21  ;;  %s934_s23 = sadd.s32 4294967295, %s1370_s22   ;;  %s1370_s22 = sphi %s1419_s22, %s26_s22   ;;  %s1366_s21 = sphi %s1417_s21, %s1844_s21   ;;  %s1362_s20 = sphi %s1415_s20, %s1852_s20   ;;  %s1358_s19 = sphi %s1413_s19, %s1842_s19   ;;  %s1354_s18 = sphi %s1411_s18, %s1851_s18   ;;  %s1350_s17 = sphi %s1409_s17, %s1850_s17   ;;  %s1346_s16 = sphi %s1407_s16, %s1849_s16   ;;  %s1342_s15 = sphi %s1405_s15, %s1848_s15   ;;  %s1338_s14 = sphi %s1403_s14, %s1847_s14   ;;  %s1334_s13 = sphi %s1401_s13, %s1846_s13   ;;  %s1330_s12 = sphi %s1399_s12, %s1845_s12  }
  0x10   : > { %s935_s24 = sadd.s32 4294967294, %s1370_s22   ;;  %s35_s25 = sadd.s32 1, %s1362_s20 }
  0x11   : > { %s38_s26 = sadd.s32 1, %s1366_s21  ;;  %p36_p0 = scmp.ge.s32.totalorder %s35_s25, 2 }
  0x12   : > { %s936_s27 = sshll.u32 %s1366_s21, 1  ;;  %s53_s29 = sadd.s32 1, %s1350_s17 }
  0x13   : > { %s43_s28 = sadd.s32 %s1362_s20, %s936_s27  ;;  %s1854_s25 = smov (%p36_p0, %s35_s25), 0 }
  0x14   : > { %1823 = sst [smem:[#allocation15_spill]] %s1854_s25  ;;  %s1856_s26 = smov (!%p36_p0, %s38_s26), %s1366_s21 }
  0x15   : > { %p44_p1 = scmp.lt.s32.totalorder %s43_s28, 2  ;;  %p60_p2 = scmp.ne.s32.totalorder %s1350_s17, %s1346_s16 }
  0x16   : > { %p40_p3 = scmp.ge.s32.totalorder %s1856_s26, 2  ;;  %p61_p4 = scmp.eq.s32.totalorder %s1370_s22, 0 }
  0x17   : > { %s1858_s28 = smov (!%p44_p1, %s43_s28), 2  ;;  %p66_p6 = scmp.ne.s32.totalorder %s1346_s16, %s1342_s15 }
  0x18   : > { %s1860_s26 = smov (%p40_p3, %s1856_s26), 0  ;;  %p1471_p5 = por %p61_p4, %p60_p2 }
  0x19   : > { %1824 = sst [smem:[#allocation16_spill]] %s1860_s26  ;;  %s937_s4 = sshll.u32 %s1860_s26, 1 }
  0x1a   : > { %p67_p7 = scmp.eq.s32.totalorder %s934_s23, 0  ;;  %s47_s5 = sadd.s32 %s937_s4, %s1854_s25 }
  0x1b   : > { %s110_s6 = ssub.s32 %s1366_s21, %s1860_s26  ;;  %p48_p8 = scmp.lt.s32.totalorder %s47_s5, 2 }
  0x1c   : > { %p1483_p9 = por %p67_p7, %p66_p6  ;;  %p111_p10 = scmp.eq.s32.totalorder %s110_s6, 0 }
  0x1d   : > { %s113_s8 = sadd.s32 1, %s1338_s14  ;;  %s1862_s5 = smov (!%p48_p8, %s47_s5), 2 }
  0x1e   : > { %s1826_s7 = scalar_select %p1483_p9, 1, 0 }
  0x1f   : > { %s1489_s9 = scalar_select %p111_p10, %s1338_s14, %s113_s8  }
  0x20   : > { %s50_s10 = ssub.s32 %s1858_s28, %s1862_s5  ;;  %p123_p11 = scmp.ne.s32.totalorder %s1338_s14, %s1334_s13 }
  0x21   : > { %p51_p12 = scmp.eq.s32.totalorder %s50_s10, 0  ;;  %p124_p13 = scmp.eq.s32.totalorder %s934_s23, 3 }
  0x22   : > { %p129_p0 = scmp.ne.s32.totalorder %s1334_s13, %s1330_s12  ;;  %p130_p1 = scmp.eq.s32.totalorder %s935_s24, 3 }
  0x23   : > { %s1501_s11 = scalar_select %p51_p12, %s1350_s17, %s53_s29  }
  0x24   : > { %p1503_p2 = por %p124_p13, %p123_p11  ;;  %p1507_p3 = por %p130_p1, %p129_p0 }
  0x25   : > { %p1058_p4 = scmp.lt.s32.totalorder %s1370_s22, 4  ;;  %s1513_s4 = sand.u32 1, %s1350_s17  }
  0x26   : > { %s1827_s15 = scalar_select %p1503_p2, 1, 0 }
  0x27   : > { %s1828_s27 = scalar_select %p1507_p3, 1, 0 }
  0x28   : > { %s1816_s23 = sshll.u32 %s1858_s28, 7  ;;  %s1815_s5 = sshll.u32 %s1513_s4, 3 }
  0x29   : > { %s1829_s0 = sld [smem:[#allocation17_spill]]  ;;  %s180_s8 = scalar_lea.vmem [#allocation2], %s1815_s5 }
  0x2a   : > { %s191_s10 = sshll.u32 %s180_s8, 4  ;;  %p1528_p6 = pnand %p1058_p4, %p1471_p5  ;;  %s1532_s10 = int_to_ptr.vmem [resolvable:$true] %s191_s10 }
  0x2b   : > { %s177_s24 = scalar_lea.sflag [#allocation3], %s1513_s4 }
  0x2c   : > { %p1154_p11 = pneg %p1528_p6 }
  0x2f   : > { %s1522_s6 = scalar_lea.hbm %s1829_s0, %s1816_s23  ;;  %s1157_s5 = scalar_lea.hbm %s1829_s0, 384 }
  0x30   : > { %s1152_s29 = scalar_lea.hbm %s1522_s6, 128  ;;  %p1158_p5 = scmp.lt.u32.totalorder %s1522_s6, %s1829_s0 }
  0x31   : > { %p1153_p10 = scmp.ne.s32.totalorder %s1522_s6, %s1152_s29  ;;  %p1159_p0 = scmp.lt.u32.totalorder %s1157_s5, %s1152_s29 }
  0x32   : > { %p1161_p4 = scmp.lt.u32.totalorder %s1152_s29, %s1522_s6 }
  0x33   : > { %p1155_p12 = pnand %p1154_p11, %p1153_p10  ;;  %p1160_p1 = por %p1159_p0, %p1158_p5 }
  0x35   : > { %p1156_p13 = pneg %p1155_p12  ;;  %p1162_p7 = por %p1161_p4, %p1160_p1 }
  0x37   : > { %p1163_p8 = pnand %p1162_p7, %p1156_p13 }
  0x39   : > { %1166 = shalt.err (!%p1163_p8)
}
  0x3a   : > { %s1167_s21 = scalar_lea.vmem %s1532_s10, 128  ;;  %s1372_s30 = smov [#allocation2]  }
  0x3b   : > { %p1168_p10 = scmp.ne.s32.totalorder %s1532_s10, %s1167_s21  ;;  %s1172_s8 = sshll.u32 %s1372_s30, 4  ;;  %s1173_s8 = int_to_ptr.vmem [resolvable:$false] %s1172_s8 }
  0x3c   : > { %s1174_s25 = scalar_lea.vmem %s1173_s8, 256  ;;  %p1175_p2 = scmp.lt.s32.totalorder %s1532_s10, %s1173_s8 }
  0x3d   : > { %p1170_p12 = pnand %p1168_p10, %p1154_p11  ;;  %p1176_p5 = scmp.lt.s32.totalorder %s1174_s25, %s1167_s21 }
  0x3f   : > { %p1171_p3 = pneg %p1170_p12  ;;  %p1177_p0 = por %p1176_p5, %p1175_p2 }
  0x41   : > { %p1178_p1 = pnand %p1177_p0, %p1171_p3 }
  0x43   : > { %1181 = shalt.err (!%p1178_p1)
}
  0x44   : > { %1047 = dma.hbm_to_vmem [thread:$0]  (!%p1528_p6), %s1522_s6, 128, %s1532_s10, %s177_s24  }
  0x45   : > { %p1831_p7 = scmp.lt.s32.totalorder %s1370_s22, 5  ;;  %p1832_p8 = scmp.ge.s32.totalorder %s1370_s22, 1 }
  0x46   : > { %s1834_s21 = sshll.u32 %s1858_s28, 7  ;;  %s1835_s8 = sshll.u32 %s1513_s4, 3 }
  0x47   : > { %p1566_p13 = pnand %p1832_p8, %p1831_p7  ;;  %s1575_s30 = scalar_lea.hbm %s1811_s1, %s1834_s21 }
  0x48   : > { %s202_s25 = scalar_lea.vmem [#allocation5], %s1835_s8  ;;  %s199_s6 = scalar_lea.sflag [#allocation6], %s1513_s4 }
  0x49   : > { %s1833_s23 = scalar_select %p1566_p13, 1, 0 }
  0x4a   : > { %s213_s0 = sshll.u32 %s202_s25, 4  ;;  %s1182_s10 = scalar_lea.hbm %s1575_s30, 128  ;;  %s214_s0 = int_to_ptr.vmem [resolvable:$true] %s213_s0 }
  0x4b   : > { %p1183_p2 = scmp.ne.s32.totalorder %s1575_s30, %s1182_s10  ;;  %s1187_s21 = scalar_lea.hbm %s1811_s1, 384 }
  0x4c   : > { %p1188_p10 = scmp.lt.u32.totalorder %s1575_s30, %s1811_s1  ;;  %p1189_p12 = scmp.lt.u32.totalorder %s1187_s21, %s1182_s10 }
  0x4d   : > { %p1185_p3 = pnand %p1183_p2, %p1154_p11  ;;  %p1191_p0 = scmp.lt.u32.totalorder %s1182_s10, %s1575_s30 }
  0x4e   : > { %p1190_p5 = por %p1189_p12, %p1188_p10 }
  0x4f   : > { %p1186_p4 = pneg %p1185_p3 }
  0x50   : > { %p1192_p1 = por %p1191_p0, %p1190_p5 }
  0x52   : > { %p1193_p7 = pnand %p1192_p1, %p1186_p4 }
  0x54   : > { %1196 = shalt.err (!%p1193_p7)
}
  0x55   : > { %s1197_s4 = scalar_lea.vmem %s214_s0, 128  ;;  %s1373_s8 = smov [#allocation5]  }
  0x56   : > { %p1198_p8 = scmp.ne.s32.totalorder %s214_s0, %s1197_s4  ;;  %s1202_s25 = sshll.u32 %s1373_s8, 4  ;;  %s1203_s25 = int_to_ptr.vmem [resolvable:$false] %s1202_s25 }
  0x57   : > { %s1204_s28 = scalar_lea.vmem %s1203_s25, 256  ;;  %p1205_p9 = scmp.lt.s32.totalorder %s214_s0, %s1203_s25 }
  0x58   : > { %p1200_p2 = pnand %p1198_p8, %p1154_p11  ;;  %p1206_p13 = scmp.lt.s32.totalorder %s1204_s28, %s1197_s4 }
  0x5a   : > { %p1201_p3 = pneg %p1200_p2  ;;  %p1207_p10 = por %p1206_p13, %p1205_p9 }
  0x5c   : > { %p1208_p12 = pnand %p1207_p10, %p1201_p3 }
  0x5e   : > { %1211 = shalt.err (!%p1208_p12)
}
  0x5f   : > { %1050 = dma.hbm_to_vmem [thread:$0]  (!%p1528_p6), %s1575_s30, 128, %s214_s0, %s199_s6  }
  0x60   : > { %p1836_p4 = scmp.ne.s32.totalorder %s1833_s23, 0 }
  0x61   : > { %s224_s10 = sand.u32 (!%p1836_p4), 1, %s1346_s16   ;;  %p1837_p11 = scmp.ne.s32.totalorder (!%p1836_p4), %s1826_s7, 0 }
  0x62   : > { %222 = sbr.rel (%p1836_p4) target bundleno = 510 (0x1fe), region = 28  ;;  %s949_s24 = sshll.u32 (!%p1836_p4), %s224_s10, 3 }
  0x63   : > { %s225_s21 = scalar_lea.sflag (!%p1836_p4), [#allocation3], %s224_s10  ;;  %s1602_s5 = scalar_lea.vmem (!%p1836_p4), [#allocation2], %s949_s24 }
  0x69   : > { %1313 = dma.done.wait (%p1837_p11), %s225_s21, 128  }
  0x6a   : > { %1315 = vsyncadd (%p1837_p11), %s225_s21, 4294967168  ;;  %s234_s29 = scalar_lea.sflag [#allocation6], %s224_s10  ;;  %s237_s26 = scalar_lea.vmem [#allocation5], %s949_s24 }
  0x6b   : > { %1317 = dma.done.wait (%p1837_p11), %s234_s29, 128  }
  0x6c   : > { %1319 = vsyncadd (%p1837_p11), %s234_s29, 4294967168  ;;  %s1613_s0 = sand.u32 1, %s1334_s13   ;;  %p952_p9 = scmp.ne.s32.totalorder %s1354_s18, 0 }
  0x6d   : > { %s1035_s23 = smul.u32 96, %s1613_s0  ;;  %s951_s30 = sshll.u32 %s1613_s0, 3  ;;  %vm283_vm0 = vcmask (!%p952_p9), 261120   ;;  %v1374_v0 = vmov (!%p952_p9), 0.0  }
  0x6e   : > { %s1619_s4 = scalar_lea.vmem [#allocation8], %s951_s30  ;;  %282 = sbr.rel (%p952_p9) target bundleno = 118 (0x76), region = 40 }
  0x6f   : > { %s1617_s6 = scalar_lea.vmem [#allocation7], %s1035_s23  ;;  %296 = vst.msk [vmem:[%s1619_s4] sm:$0xff] (!%p952_p9), %vm283_vm0, %v1374_v0 }
  0x70   : > { %284 = vst.msk [vmem:[%s1617_s6] sm:$0xff] (!%p952_p9), %vm283_vm0, %v1374_v0  ;;  %285 = vst.msk [vmem:[%s1617_s6 + $0x8] sm:$0xff] (!%p952_p9), %vm283_vm0, %v1374_v0 }
  0x71   : > { %286 = vst.msk [vmem:[%s1617_s6 + $0x10] sm:$0xff] (!%p952_p9), %vm283_vm0, %v1374_v0  ;;  %287 = vst.msk [vmem:[%s1617_s6 + $0x18] sm:$0xff] (!%p952_p9), %vm283_vm0, %v1374_v0 }
  0x72   : > { %288 = vst.msk [vmem:[%s1617_s6 + $0x20] sm:$0xff] (!%p952_p9), %vm283_vm0, %v1374_v0  ;;  %289 = vst.msk [vmem:[%s1617_s6 + $0x28] sm:$0xff] (!%p952_p9), %vm283_vm0, %v1374_v0 }
  0x73   : > { %290 = vst.msk [vmem:[%s1617_s6 + $0x30] sm:$0xff] (!%p952_p9), %vm283_vm0, %v1374_v0  ;;  %291 = vst.msk [vmem:[%s1617_s6 + $0x38] sm:$0xff] (!%p952_p9), %vm283_vm0, %v1374_v0 }
  0x74   : > { %292 = vst.msk [vmem:[%s1617_s6 + $0x40] sm:$0xff] (!%p952_p9), %vm283_vm0, %v1374_v0  ;;  %293 = vst.msk [vmem:[%s1617_s6 + $0x48] sm:$0xff] (!%p952_p9), %vm283_vm0, %v1374_v0 }
  0x75   : > { %294 = vst.msk [vmem:[%s1617_s6 + $0x50] sm:$0xff] %vm283_vm0, %v1374_v0  ;;  %295 = vst.msk [vmem:[%s1617_s6 + $0x58] sm:$0xff] %vm283_vm0, %v1374_v0 }
  0x76 PF: > { %s953_s7 = sshll.u32 %s1358_s19, 1  ;;  %v299_v1 = vld [vmem:[%s1602_s5] sm:$0xff]  ;;  %v300_v2 = vld [vmem:[%s237_s26] sm:$0xff]  ;;  %vm341_vm2 = vcmask 64512   ;;  %vm717_vm3 = vcmask 260096   ;;  %vm443_vm4 = vcmask 261120  }
  0x77   : > { %s298_s8 = sadd.s32 %s1354_s18, %s953_s7  ;;  %vm750_vm5 = vcmask 1040384   ;;  %vm752_vm6 = vcmask 1041408   ;;  %vm754_vm7 = vcmask 1042432   ;;  %vm756_vm8 = vcmask 1043456   ;;  %v749_v0 = vld [vmem:[%s1619_s4] sm:$0xff]  ;;  %s988_s18 = sshll.u32 %s1358_s19, 7 }
  0x78   : > { %v301_v3 = vstv %s298_s8  ;;  %vm758_vm9 = vcmask 1044480   ;;  %s1683_s10 = scalar_lea.hbm %s1813_s3, %s988_s18  ;;  %s798_s24 = sshll.u32 %s1619_s4, 4  ;;  %s799_s24 = int_to_ptr.vmem [resolvable:$true] %s798_s24 }
  0x79   : > { %vm1638_vm1 = vcmp.lt.s32.totalorder %v301_v3, 3  ;;  %s768_s21 = scalar_lea.sflag [#allocation9], %s1613_s0  ;;  %s1212_s5 = scalar_lea.vmem %s799_s24, 128 }
  0x7a   : > { %v303_v5 = vsel %vm1638_vm1, %v299_v1, 0.0  ;;  %v304_v6 = vsel %vm1638_vm1, %v300_v2, 0.0  ;;  %1009 = vmatprep.subr.msk.mxu0 %vm1638_vm1, %v299_v1  ;;  %1033 = vmatprep.subr.msk.mxu1 %vm1638_vm1, %v299_v1  ;;  %p1213_p6 = scmp.ne.s32.totalorder %s799_s24, %s1212_s5  ;;  %p1840_p13 = scmp.ne.s32.totalorder %s1827_s15, 0 }
  0x7b   : > { %309 = vxpose.xlu0.b32.start.end [1/1] (short) (narrow) %v303_v5, 32  ;;  %v705_v7 = vrot.slane %v303_v5, 7  ;;  %v709_v8 = vrot.slane %v304_v6, 7  ;;  %1010 = vmatpush3.msk.msra.mxu0 %vm1638_vm1, %v299_v1  ;;  %v689_v23 = vsel %vm443_vm4, %v303_v5, 0.0  ;;  %v697_v24 = vsel %vm443_vm4, %v304_v6, 0.0  ;;  %s1375_s29 = smov [#allocation8]  }
  0x7c   : > { %1025 = vmatprep.subr.msk.mxu0 %vm1638_vm1, %v300_v2  ;;  %1034 = vmatpush3.msk.msra.mxu1 %vm1638_vm1, %v299_v1  ;;  %v690_v27 = vrot.slane %v689_v23, 4  ;;  %v698_v28 = vrot.slane %v697_v24, 4  ;;  %p1214_p5 = pnand %p1213_p6, %p1840_p13  ;;  %s1216_s26 = sshll.u32 %s1375_s29, 4  ;;  %s1217_s26 = int_to_ptr.vmem [resolvable:$false] %s1216_s26 }
  0x7d   : > { %v707_v9 = vsub.f32 %v303_v5, %v705_v7  ;;  %v711_v10 = vsub.f32 %v304_v6, %v709_v8  ;;  %1017 = vmatprep.subr.msk.mxu1 %vm1638_vm1, %v300_v2  ;;  %s1218_s23 = scalar_lea.vmem %s1217_s26, 256  ;;  %p1219_p1 = scmp.lt.s32.totalorder %s799_s24, %s1217_s26 }
  0x7e   : > { %v691_v32 = vadd.f32 %v690_v27, %v689_v23  ;;  %v699_v33 = vadd.f32 %v698_v28, %v697_v24  ;;  %p1215_p0 = pneg %p1214_p5  ;;  %p1220_p7 = scmp.lt.s32.totalorder %s1218_s23, %s1212_s5 }
  0x7f   : > { %v737_v11 = vmul.f32 %v711_v10, %v707_v9  ;;  %v712_v20 = vmul.f32 %v707_v9, %v707_v9  ;;  %v725_v21 = vmul.f32 %v711_v10, %v711_v10 }
  0x80   : > { %v692_v38 = vrot.slane %v691_v32, 2  ;;  %v700_v39 = vrot.slane %v699_v33, 2  ;;  %p1221_p8 = por %p1220_p7, %p1219_p1 }
  0x81   : > { %v715_v22 = vrot.slane %v712_v20, 1  ;;  %v728_v25 = vrot.slane %v725_v21, 1  ;;  %v740_v29 = vrot.slane %v737_v11, 1 }
  0x82   : > { %v693_v43 = vadd.f32 %v692_v38, %v691_v32  ;;  %v701_v44 = vadd.f32 %v700_v39, %v699_v33  ;;  %p1222_p2 = pnand %p1221_p8, %p1215_p0 }
  0x83   : > { %v718_v26 = vsel %vm717_vm3, %v715_v22, 0.0  ;;  %v730_v31 = vsel %vm717_vm3, %v728_v25, 0.0  ;;  %v742_v35 = vsel %vm717_vm3, %v740_v29, 0.0 }
  0x84   : > { %v719_v30 = vrot.slane %v718_v26, 4  ;;  %v731_v34 = vrot.slane %v730_v31, 4  ;;  %v743_v37 = vrot.slane %v742_v35, 4  ;;  %v694_v48 = vrot.slane %v693_v43, 1 }
  0x85   : > { %v702_v49 = vrot.slane %v701_v44, 1 }
  0x86   : > { %v720_v36 = vadd.f32 %v719_v30, %v718_v26  ;;  %v732_v40 = vadd.f32 %v731_v34, %v730_v31  ;;  %v744_v42 = vadd.f32 %v743_v37, %v742_v35  ;;  %v695_v53 = vadd.f32 %v694_v48, %v693_v43 }
  0x87   : > { %v703_v54 = vadd.f32 %v702_v49, %v701_v44 }
  0x88   : > { %453 = vxpose.xlu0.b32.start.end [1/1] (short) (narrow) %v304_v6, 32  ;;  %v721_v41 = vrot.slane %v720_v36, 2  ;;  %v733_v45 = vrot.slane %v732_v40, 2  ;;  %v745_v47 = vrot.slane %v744_v42, 2 }
  0x89   : > { %v751_v59 = vsel %vm750_vm5, %v695_v53, %v703_v54 }
  0x8a   : > { %v722_v46 = vadd.f32 %v721_v41, %v720_v36  ;;  %v734_v50 = vadd.f32 %v733_v45, %v732_v40  ;;  %v746_v52 = vadd.f32 %v745_v47, %v744_v42 }
  0x8c   : > { %v723_v51 = vrot.slane %v722_v46, 1  ;;  %v735_v55 = vrot.slane %v734_v50, 1  ;;  %v747_v57 = vrot.slane %v746_v52, 1 }
  0x8e   : > { %v724_v56 = vadd.f32 %v723_v51, %v722_v46  ;;  %v736_v58 = vadd.f32 %v735_v55, %v734_v50  ;;  %v748_v60 = vadd.f32 %v747_v57, %v746_v52 }
  0x90   : > { %v753_v61 = vsel %vm752_vm6, %v751_v59, %v724_v56 }
  0x91   : > { %v755_v62 = vsel %vm754_vm7, %v753_v61, %v736_v58 }
  0x92   : > { %v757_v63 = vsel %vm756_vm8, %v755_v62, %v748_v60 }
  0x93   : > { %v759_v1 = vsel %vm758_vm9, %v757_v63, 0.0 }
  0xfb   : > { %v325_v12 = vpop.trf.xlu0 }
  0xfc   : > { %1011 = vmatprep.mubr.msk.f32.mxu0 %vm341_vm2, %v325_v12 }
  0xff   : > { %v326_v13 = vpop.trf.xlu0 }
 0x100   : > { %1012 = vmatmul.mubr.msk.f32.vlgmr.msra.gmra.mrb[0].mxu0 %vm341_vm2, %v326_v13 }
 0x101   : > { %1027 = vmatprep.mubr.msk.f32.mxu0 %vm341_vm2, %v325_v12  ;;  %1026 = vmatpush3.msk.msra.mxu0 %vm1638_vm1, %v300_v2 }
 0x103   : > { %v327_v14 = vpop.trf.xlu0 }
 0x104   : > { %1014 = vmatprep.mubr.msk.f32.mxu1 %vm341_vm2, %v327_v14  ;;  %1028 = vmatmul.mubr.msk.f32.vlgmr.msra.gmra.mrb[2].mxu0 %vm341_vm2, %v326_v13 }
 0x105   : > { %1030 = vmatprep.mubr.msk.f32.mxu0 %vm341_vm2, %v327_v14 }
 0x107   : > { %v328_v15 = vpop.trf.xlu0 }
 0x108   : > { %1015 = vmatmul.mubr.msk.f32.vlgmr.msra.gmra.mrb[0].mxu1 %vm341_vm2, %v328_v15  ;;  %1031 = vmatmul.mubr.msk.f32.gmra.mrb[4].mxu0 %vm341_vm2, %v328_v15 }
 0x109   : > { %1018 = vmatpush3.msk.msra.mxu1 %vm1638_vm1, %v300_v2  ;;  %v760_v2 = vadd.f32 %v759_v1, %v749_v0 }
 0x10b   : > { %v469_v16 = vpop.trf.xlu0  ;;  %761 = vst.msk [vmem:[%s1619_s4] sm:$0xff] %vm443_vm4, %v760_v2 }
 0x10c   : > { %1019 = vmatprep.mubr.msk.f32.mxu1 %vm341_vm2, %v469_v16 }
 0x10f   : > { %v470_v17 = vpop.trf.xlu0 }
 0x110   : > { %1020 = vmatmul.mubr.msk.f32.vlgmr.msra.gmra.mrb[2].mxu1 %vm341_vm2, %v470_v17 }
 0x113   : > { %v471_v18 = vpop.trf.xlu0 }
 0x114   : > { %1022 = vmatprep.mubr.msk.f32.mxu1 %vm341_vm2, %v471_v18 }
 0x117   : > { %v472_v19 = vpop.trf.xlu0 }
 0x118   : > { %1023 = vmatmul.mubr.msk.f32.gmra.mrb[4].mxu1 %vm341_vm2, %v472_v19 }
 0x119   : > { %1225 = shalt.err (!%p1222_p2)
}
 0x11a   : > { %s1226_s30 = scalar_lea.hbm %s1683_s10, 128  ;;  %s1230_s8 = scalar_lea.hbm %s1813_s3, 256 }
 0x11b   : > { %p1227_p3 = scmp.ne.s32.totalorder %s1683_s10, %s1226_s30  ;;  %p1231_p4 = scmp.lt.u32.totalorder %s1683_s10, %s1813_s3 }
 0x11c   : > { %p1232_p11 = scmp.lt.u32.totalorder %s1230_s8, %s1226_s30  ;;  %p1234_p6 = scmp.lt.u32.totalorder %s1226_s30, %s1683_s10 }
 0x11d   : > { %p1228_p10 = pnand %p1227_p3, %p1840_p13 }
 0x11e   : > { %p1233_p9 = por %p1232_p11, %p1231_p4 }
 0x11f   : > { %p1229_p12 = pneg %p1228_p10 }
 0x120   : > { %p1235_p5 = por %p1234_p6, %p1233_p9 }
 0x122   : > { %p1236_p0 = pnand %p1235_p5, %p1229_p12 }
 0x124   : > { %1239 = shalt.err (!%p1236_p0)
}
 0x125   : > { %1041 = dma.vmem_to_hbm [thread:$0]  (%p1840_p13), %s799_s24, 128, %s1683_s10, %s768_s21   ;;  %v306_v3 = vld [vmem:[%s1617_s6 + $0x8] sm:$0xff]  ;;  %v305_v4 = vld [vmem:[%s1617_s6] sm:$0xff]  ;;  %v308_v15 = vld [vmem:[%s1617_s6 + $0x18] sm:$0xff] }
 0x126   : > { %v973_v9 = vld [vmem:[%s1617_s6 + $0x48] sm:$0xff]  ;;  %v972_v10 = vld [vmem:[%s1617_s6 + $0x40] sm:$0xff]  ;;  %v975_v16 = vld [vmem:[%s1617_s6 + $0x58] sm:$0xff]  ;;  %s993_s28 = smul.u32 1536, %s1358_s19  ;;  %s782_s10 = sshll.u32 %s1617_s6, 4  ;;  %s1743_s10 = int_to_ptr.vmem [resolvable:$true] %s782_s10 }
 0x127   : > { %v307_v17 = vld [vmem:[%s1617_s6 + $0x10] sm:$0xff]  ;;  %v960_v27 = vld [vmem:[%s1617_s6 + $0x28] sm:$0xff]  ;;  %v959_v28 = vld [vmem:[%s1617_s6 + $0x20] sm:$0xff]  ;;  %s763_s19 = scalar_lea.sflag [#allocation4], %s1613_s0  ;;  %s1240_s29 = scalar_lea.vmem %s1743_s10, 1536 }
 0x128   : > { %v974_v18 = vld [vmem:[%s1617_s6 + $0x50] sm:$0xff]  ;;  %v962_v33 = vld [vmem:[%s1617_s6 + $0x38] sm:$0xff]  ;;  %s1741_s5 = scalar_lea.hbm %s1812_s2, %s993_s28  ;;  %p1241_p1 = scmp.ne.s32.totalorder %s1743_s10, %s1240_s29 }
 0x129   : > { %v961_v34 = vld [vmem:[%s1617_s6 + $0x30] sm:$0xff]  ;;  %s1376_s26 = smov [#allocation7]  }
 0x12a   : > { %p1242_p7 = pnand %p1241_p1, %p1840_p13  ;;  %s1244_s23 = sshll.u32 %s1376_s26, 4  ;;  %s1245_s23 = int_to_ptr.vmem [resolvable:$false] %s1244_s23 }
 0x12b   : > { %s1246_s30 = scalar_lea.vmem %s1245_s23, 3072  ;;  %p1247_p2 = scmp.lt.s32.totalorder %s1743_s10, %s1245_s23 }
 0x12c   : > { %p1243_p8 = pneg %p1242_p7  ;;  %p1248_p3 = scmp.lt.s32.totalorder %s1246_s30, %s1240_s29 }
 0x12e   : > { %p1249_p10 = por %p1248_p3, %p1247_p2 }
 0x130   : > { %p1250_p12 = pnand %p1249_p10, %p1243_p8 }
 0x1d3   : > { %v1013_v5 = vpop.f32.mrb[0].mxu0 }
 0x1d4   : > { %v440_v6 = vadd.f32 %v1013_v5, %v306_v3  ;;  %v420_v7 = vpop.f32.mrb[1].mxu0 }
 0x1d5   : > { %v439_v8 = vadd.f32 %v420_v7, %v305_v4 }
 0x1d6   : > { %445 = vst.msk [vmem:[%s1617_s6 + $0x8] sm:$0xff] %vm443_vm4, %v440_v6 }
 0x1d7   : > { %444 = vst.msk [vmem:[%s1617_s6] sm:$0xff] %vm443_vm4, %v439_v8  ;;  %v1029_v11 = vpop.f32.mrb[2].mxu0 }
 0x1d8   : > { %v681_v12 = vadd.f32 %v1029_v11, %v973_v9  ;;  %v661_v13 = vpop.f32.mrb[3].mxu0 }
 0x1d9   : > { %v680_v14 = vadd.f32 %v972_v10, %v661_v13 }
 0x1da   : > { %982 = vst.msk [vmem:[%s1617_s6 + $0x48] sm:$0xff] %vm443_vm4, %v681_v12 }
 0x1db   : > { %981 = vst.msk [vmem:[%s1617_s6 + $0x40] sm:$0xff] %vm443_vm4, %v680_v14  ;;  %v1016_v19 = vpop.f32.mrb[0].mxu1  ;;  %v1032_v20 = vpop.f32.mrb[4].mxu0 }
 0x1dc   : > { %v442_v21 = vadd.f32 %v1016_v19, %v308_v15  ;;  %v683_v22 = vadd.f32 %v1032_v20, %v975_v16  ;;  %v430_v23 = vpop.f32.mrb[1].mxu1  ;;  %v671_v24 = vpop.f32.mrb[5].mxu0 }
 0x1dd   : > { %v441_v25 = vadd.f32 %v430_v23, %v307_v17  ;;  %v682_v26 = vadd.f32 %v974_v18, %v671_v24 }
 0x1de   : > { %447 = vst.msk [vmem:[%s1617_s6 + $0x18] sm:$0xff] %vm443_vm4, %v442_v21  ;;  %984 = vst.msk [vmem:[%s1617_s6 + $0x58] sm:$0xff] %vm443_vm4, %v683_v22 }
 0x1df   : > { %446 = vst.msk [vmem:[%s1617_s6 + $0x10] sm:$0xff] %vm443_vm4, %v441_v25  ;;  %983 = vst.msk [vmem:[%s1617_s6 + $0x50] sm:$0xff] %vm443_vm4, %v682_v26 }
 0x1e3   : > { %v1021_v29 = vpop.f32.mrb[2].mxu1 }
 0x1e4   : > { %v583_v30 = vadd.f32 %v1021_v29, %v960_v27  ;;  %v563_v31 = vpop.f32.mrb[3].mxu1 }
 0x1e5   : > { %v582_v32 = vadd.f32 %v959_v28, %v563_v31 }
 0x1e6   : > { %969 = vst.msk [vmem:[%s1617_s6 + $0x28] sm:$0xff] %vm443_vm4, %v583_v30 }
 0x1e7   : > { %968 = vst.msk [vmem:[%s1617_s6 + $0x20] sm:$0xff] %vm443_vm4, %v582_v32 }
 0x1eb   : > { %v1024_v35 = vpop.f32.mrb[4].mxu1 }
 0x1ec   : > { %v585_v36 = vadd.f32 %v1024_v35, %v962_v33  ;;  %v573_v37 = vpop.f32.mrb[5].mxu1 }
 0x1ed   : > { %v584_v38 = vadd.f32 %v961_v34, %v573_v37 }
 0x1ee   : > { %971 = vst.msk [vmem:[%s1617_s6 + $0x38] sm:$0xff] %vm443_vm4, %v585_v36 }
 0x1ef   : > { %970 = vst.msk [vmem:[%s1617_s6 + $0x30] sm:$0xff] %vm443_vm4, %v584_v38 }
 0x1f0   : > { %1253 = shalt.err (!%p1250_p12)
}
 0x1f1   : > { %s1254_s6 = scalar_lea.hbm %s1741_s5, 1536  ;;  %s1258_s8 = scalar_lea.hbm %s1812_s2, 3072 }
 0x1f2   : > { %p1255_p4 = scmp.ne.s32.totalorder %s1741_s5, %s1254_s6  ;;  %p1259_p6 = scmp.lt.u32.totalorder %s1741_s5, %s1812_s2 }
 0x1f3   : > { %p1260_p5 = scmp.lt.u32.totalorder %s1258_s8, %s1254_s6  ;;  %p1262_p1 = scmp.lt.u32.totalorder %s1254_s6, %s1741_s5 }
 0x1f4   : > { %p1256_p11 = pnand %p1255_p4, %p1840_p13 }
 0x1f5   : > { %p1261_p0 = por %p1260_p5, %p1259_p6 }
 0x1f6   : > { %p1257_p9 = pneg %p1256_p11 }
 0x1f7   : > { %p1263_p7 = por %p1262_p1, %p1261_p0 }
 0x1f9   : > { %p1264_p8 = pnand %p1263_p7, %p1257_p9 }
 0x1fb   : > { %1267 = shalt.err (!%p1264_p8)
}
 0x1fc   : > { %s1377_s28 = smov 128   ;;  %s1378_s24 = smov 8  }
 0x1fd   : > { %1040 = dma.vmem_to_hbm [thread:$0]  (%p1840_p13), %s1743_s10, 1536, %s1741_s5, %s763_s19, %s1377_s28, %s1377_s28, %s1378_s24  }
 0x1fe PF: > { %p1059_p2 = scmp.ge.s32.totalorder %s1370_s22, 2  ;;  %s810_s21 = sand.u32 1, %s1330_s12  }
 0x1ff   : > { %p1841_p3 = scmp.ne.s32.totalorder %s1828_s27, 0  ;;  %s811_s29 = scalar_lea.sflag [#allocation4], %s810_s21 }
 0x201   : > { %p1052_p10 = pnand %p1059_p2, %p1841_p3 }
 0x203   : > { %1321 = dma.done.wait (!%p1052_p10), %s811_s29, 1536  }
 0x204   : > { %1323 = vsyncadd (!%p1052_p10), %s811_s29, 4294965760  ;;  %s820_s26 = scalar_lea.sflag [#allocation9], %s810_s21 }
 0x205   : > { %1325 = dma.done.wait (!%p1052_p10), %s820_s26, 128  }
 0x206   : > { %1327 = vsyncadd (!%p1052_p10), %s820_s26, 4294967168  ;;  %s26_s22 = sadd.s32 1, %s1370_s22   ;;  %s1842_s19 = sld [smem:[#allocation14_spill]] }
 0x207   : > { %p23_p12 = scmp.ge.s32.totalorder %s26_s22, 6   ;;  %s1843_s0 = sld [smem:[#allocation15_spill]] }
 0x208   : > { %s1844_s21 = sld [smem:[#allocation16_spill]]  ;;  %s1845_s12 = smov %s1334_s13 }
 0x209   : > { %s1846_s13 = smov %s1338_s14  ;;  %s1847_s14 = smov %s1489_s9 }
 0x20a   : > { %s1848_s15 = smov %s1346_s16  ;;  %s1849_s16 = smov %s1350_s17 }
 0x20b   : > { %s1850_s17 = smov %s1501_s11  ;;  %s1851_s18 = smov %s1362_s20 }
 0x20c   :  { %25 = sbr.rel (!%p23_p12) target bundleno = 15 (0xf), region = 109 }
 0x20d   : > { %s1852_s20 = smov %s1843_s0 }
 0x213   :  { %825 = vsyncpa [#allocation3], 1 }
 0x214   :  { %827 = vsyncpa [#allocation3 + $0x1], 1 }
 0x215   :  { %828 = vsyncpa [#allocation6], 1 }
 0x216   :  { %830 = vsyncpa [#allocation6 + $0x1], 1 }
 0x217   :  { %831 = vsyncpa [#allocation4], 1 }
 0x218   :  { %833 = vsyncpa [#allocation4 + $0x1], 1 }
 0x219   :  { %834 = vsyncpa [#allocation9], 1 }
 0x21a   :  { %836 = vsyncpa [#allocation9 + $0x1], 1 }

</bundles_post_ra>
